<compile_context>
chip_gen: v7x
topology: tpu7x:2x2x1
jax: 0.10.0
libtpu: 0.0.40
codegen_flags: <defaults>
</compile_context>

<pallas_src>
import functools
import math

import jax
import jax.numpy as jnp
from jax.experimental import pallas as pl
from jax.experimental.pallas import tpu as pltpu


# ---------------------------------------------------------------------------
# Pallas kernels
# ---------------------------------------------------------------------------

def _fc_bn_lrelu_kernel(z_ref, w_ref, scale_ref, shift_ref, o_ref):
    """out = LeakyReLU_0.2((z @ W) * scale + shift)   (Linear + folded BN1d)."""
    z = z_ref[...].astype(jnp.bfloat16)
    y = jnp.dot(z, w_ref[...], preferred_element_type=jnp.float32)
    y = y * scale_ref[...] + shift_ref[...]
    o_ref[...] = jnp.where(y > 0.0, y, 0.2 * y)


def _conv1x1_bn_kernel(x_ref, w_ref, scale_ref, shift_ref, o_ref):
    """Learned shortcut: out = (x @ Ws) * scale + shift (no activation)."""
    y = jnp.dot(x_ref[...], w_ref[...], preferred_element_type=jnp.float32)
    o_ref[...] = y * scale_ref[...] + shift_ref[...]


def _conv3x3_accum(xg_ref, w_ref, *, wp, n_rows):
    """3x3 'same' conv over a zero-padded, row-flattened NHWC feature map.

    xg_ref : (n_rows + 2*(wp+1), Cin) bf16 -- padded map flattened to rows of
             width wp (= W + 2), with wp+1 zero guard rows on each side.
    w_ref  : (9, Cin, Cout) bf16 (taps in (dy, dx) row-major order).
    Returns the f32 accumulator over the *extended* (padded) grid; border rows
    are garbage and are sliced away in the JAX wrapper.
    """
    g = wp + 1
    cout = w_ref.shape[-1]
    acc = jnp.zeros((n_rows, cout), dtype=jnp.float32)
    for k in range(9):
        dy, dx = divmod(k, 3)
        start = g + (dy - 1) * wp + (dx - 1)          # static offset per tap
        patch = xg_ref[start:start + n_rows, :]       # (n_rows, Cin) bf16
        acc = acc + jnp.dot(patch, w_ref[k], preferred_element_type=jnp.float32)
    return acc


def _conv3x3_bn_lrelu_kernel(xg_ref, w_ref, scale_ref, shift_ref, o_ref, *, wp):
    y = _conv3x3_accum(xg_ref, w_ref, wp=wp, n_rows=o_ref.shape[0])
    y = y * scale_ref[...] + shift_ref[...]
    o_ref[...] = jnp.where(y > 0.0, y, 0.2 * y)


def _conv3x3_bn_res_lrelu_kernel(xg_ref, xs_ref, w_ref, scale_ref, shift_ref, o_ref,
                                 *, wp, res_ratio):
    y = _conv3x3_accum(xg_ref, w_ref, wp=wp, n_rows=o_ref.shape[0])
    y = y * scale_ref[...] + shift_ref[...]
    y = xs_ref[...] + res_ratio * y
    o_ref[...] = jnp.where(y > 0.0, y, 0.2 * y)


def _conv3x3_bias_tanh_kernel(xg_ref, w_ref, bias_ref, o_ref, *, wp):
    y = _conv3x3_accum(xg_ref, w_ref, wp=wp, n_rows=o_ref.shape[0])
    o_ref[...] = jnp.tanh(y + bias_ref[...])


# ---------------------------------------------------------------------------
# pallas_call plumbing
# ---------------------------------------------------------------------------

def _full_spec(shape):
    zero = (0,) * len(shape)
    return pl.BlockSpec(shape, lambda *_: zero)


def _pcall(kernel, out_rows, out_cols, *args):
    return pl.pallas_call(
        kernel,
        out_shape=jax.ShapeDtypeStruct((out_rows, out_cols), jnp.float32),
        in_specs=[_full_spec(a.shape) for a in args],
        out_specs=_full_spec((out_rows, out_cols)),
        compiler_params=pltpu.CompilerParams(vmem_limit_bytes=8 << 20),
    )(*args)


def _prep(x):
    """(B,H,W,C) f32 -> zero-padded, row-flattened, guard-padded bf16 matrix."""
    b, h, w, c = x.shape
    wp = w + 2
    xp = jnp.pad(x, ((0, 0), (1, 1), (1, 1), (0, 0)))
    flat = xp.reshape(b * (h + 2) * wp, c).astype(jnp.bfloat16)
    g = wp + 1
    return jnp.pad(flat, ((g, g), (0, 0)))


def _unprep(y_flat, b, h, w):
    """(B*(H+2)*(W+2), C) extended-grid result -> (B,H,W,C) valid interior."""
    c = y_flat.shape[-1]
    return y_flat.reshape(b, h + 2, w + 2, c)[:, 1:h + 1, 1:w + 1, :]


# ---------------------------------------------------------------------------
# Model forward
# ---------------------------------------------------------------------------

def _resnet_block(x, blk, res_ratio):
    b, h, w, cin = x.shape
    wp = w + 2
    n = b * (h + 2) * wp
    g = wp + 1
    chid = blk['w0'].shape[-1]
    cout = blk['w1'].shape[-1]

    xpad = jnp.pad(x, ((0, 0), (1, 1), (1, 1), (0, 0))).reshape(n, cin)   # f32, extended grid
    xg = jnp.pad(xpad.astype(jnp.bfloat16), ((g, g), (0, 0)))             # guarded bf16

    if 'ws' in blk:   # learned 1x1 shortcut + BN, evaluated on the extended grid
        xs = _pcall(_conv1x1_bn_kernel, n, cout,
                    xpad.astype(jnp.bfloat16), blk['ws'], blk['scale_s'], blk['shift_s'])
    else:             # identity shortcut
        xs = xpad

    dx = _pcall(functools.partial(_conv3x3_bn_lrelu_kernel, wp=wp),
                n, chid, xg, blk['w0'], blk['scale0'], blk['shift0'])
    dxg = _prep(_unprep(dx, b, h, w))   # zero the garbage border, re-pad + guard
    out = _pcall(functools.partial(_conv3x3_bn_res_lrelu_kernel, wp=wp, res_ratio=res_ratio),
                 n, cout, dxg, xs, blk['w1'], blk['scale1'], blk['shift1'])
    return _unprep(out, b, h, w)


def dcgan_resnet_generator(z, params):
    cfg = params['cfg']
    b = z.shape[0]
    s0, nf0 = cfg['s0'], cfg['nf0']

    # fc + folded BN1d + LeakyReLU, then view(B, nf0, s0, s0) and go NHWC.
    h = _pcall(_fc_bn_lrelu_kernel, b, nf0 * s0 * s0,
               z, params['fc_w'], params['fc_scale'], params['fc_shift'])
    x = h.reshape(b, nf0, s0, s0).transpose(0, 2, 3, 1)

    for blk in params['blocks']:
        x = _resnet_block(x, blk, cfg['res_ratio'])
        if blk['upsample']:
            x = jnp.repeat(jnp.repeat(x, 2, axis=1), 2, axis=2)   # nearest 2x

    bb, hh, ww, _ = x.shape
    n = bb * (hh + 2) * (ww + 2)
    y = _pcall(functools.partial(_conv3x3_bias_tanh_kernel, wp=ww + 2),
               n, cfg['output_nc'], _prep(x), params['img_w'], params['img_b'])
    y = _unprep(y, bb, hh, ww)
    return y.transpose(0, 3, 1, 2)        # NCHW, like the torch module


# ---------------------------------------------------------------------------
# Parameter construction (deterministic, shapes match the torch module)
# ---------------------------------------------------------------------------

def init_params(key, cfg):
    nz, nf, nf_max = cfg['input_nz'], cfg['nf'], cfg['nf_max']
    img_size, s0, out_nc = cfg['img_size'], cfg['s0'], cfg['output_nc']
    nlayers = int(math.log2(img_size / s0))
    nf0 = min(nf_max, nf * 2 ** (nlayers + 1))
    cfg = dict(cfg, nf0=nf0, nlayers=nlayers)

    keys = iter(jax.random.split(key, 128))
    nk = lambda: next(keys)

    def bn_fold(c, bias=None):
        gamma = jax.random.uniform(nk(), (1, c), jnp.float32, 0.8, 1.2)
        beta = 0.1 * jax.random.normal(nk(), (1, c), jnp.float32)
        mean = 0.1 * jax.random.normal(nk(), (1, c), jnp.float32)
        var = jax.random.uniform(nk(), (1, c), jnp.float32, 0.5, 1.5)
        scale = gamma / jnp.sqrt(var + 1e-5)
        shift = beta - mean * scale
        if bias is not None:
            shift = shift + bias * scale
        return scale, shift

    def conv_w(cin, cout, taps=9):
        bound = 1.0 / math.sqrt(cin * taps)
        w = jax.random.uniform(nk(), (taps, cin, cout), jnp.float32, -bound, bound)
        return w.astype(jnp.bfloat16)

    params = {'cfg': cfg}

    # fc (Linear(nz, nf0*s0*s0)) + BN1d folded into scale/shift
    dfc = nf0 * s0 * s0
    bound = 1.0 / math.sqrt(nz)
    fc_w = jax.random.uniform(nk(), (nz, dfc), jnp.float32, -bound, bound)
    fc_b = jax.random.uniform(nk(), (1, dfc), jnp.float32, -bound, bound)
    params['fc_w'] = fc_w.astype(jnp.bfloat16)
    params['fc_scale'], params['fc_shift'] = bn_fold(dfc, bias=fc_b)

    # ResNet block channel schedule (matches the torch constructor)
    specs = []
    for i in range(nlayers, 0, -1):
        specs.append((min(nf * 2 ** (i + 1), nf_max), min(nf * 2 ** i, nf_max), True))
    specs.append((min(nf * 2, nf_max), min(nf, nf_max), False))
    specs.append((min(nf, nf_max), min(nf, nf_max), False))

    blocks = []
    for cin, cout, up in specs:
        chid = min(cin, cout)
        blk = {'upsample': up, 'w0': conv_w(cin, chid)}
        blk['scale0'], blk['shift0'] = bn_fold(chid)
        blk['w1'] = conv_w(chid, cout)
        blk['scale1'], blk['shift1'] = bn_fold(cout)
        if cin != cout:                                  # learned shortcut
            blk['ws'] = conv_w(cin, cout, taps=1)[0]     # (cin, cout) bf16
            blk['scale_s'], blk['shift_s'] = bn_fold(cout)
        blocks.append(blk)
    params['blocks'] = blocks

    # conv_img: Conv2d(nf, output_nc, 3, padding=1) with bias, then tanh
    params['img_w'] = conv_w(nf, out_nc)
    bimg = 1.0 / math.sqrt(nf * 9)
    params['img_b'] = jax.random.uniform(nk(), (1, out_nc), jnp.float32, -bimg, bimg)
    return params


# ---------------------------------------------------------------------------
# Pure-JAX reference (uses the same bf16 weights / activation quantization)
# ---------------------------------------------------------------------------

def _reference(z, params):
    cfg = params['cfg']
    bf = jnp.bfloat16
    lrelu = lambda t: jnp.where(t > 0, t, 0.2 * t)

    h = jnp.dot(z.astype(bf), params['fc_w'], preferred_element_type=jnp.float32)
    h = lrelu(h * params['fc_scale'] + params['fc_shift'])
    b = z.shape[0]
    x = h.reshape(b, cfg['nf0'], cfg['s0'], cfg['s0']).transpose(0, 2, 3, 1)

    def conv3x3(t, w9):
        cin, cout = w9.shape[1], w9.shape[2]
        w = w9.reshape(3, 3, cin, cout)
        return jax.lax.conv_general_dilated(
            t.astype(bf), w, window_strides=(1, 1), padding='SAME',
            dimension_numbers=('NHWC', 'HWIO', 'NHWC'),
            preferred_element_type=jnp.float32)

    for blk in params['blocks']:
        if 'ws' in blk:
            nn_ = x.shape[0] * x.shape[1] * x.shape[2]
            xs = jnp.dot(x.astype(bf).reshape(nn_, -1), blk['ws'],
                         preferred_element_type=jnp.float32)
            xs = (xs * blk['scale_s'] + blk['shift_s']).reshape(
                x.shape[0], x.shape[1], x.shape[2], blk['ws'].shape[-1])
        else:
            xs = x
        dx = lrelu(conv3x3(x, blk['w0']) * blk['scale0'] + blk['shift0'])
        dx = conv3x3(dx, blk['w1']) * blk['scale1'] + blk['shift1']
        x = lrelu(xs + cfg['res_ratio'] * dx)
        if blk['upsample']:
            x = jnp.repeat(jnp.repeat(x, 2, axis=1), 2, axis=2)

    y = conv3x3(x, params['img_w']) + params['img_b']
    return jnp.tanh(y).transpose(0, 3, 1, 2)


# ---------------------------------------------------------------------------
# Self-test
# ---------------------------------------------------------------------------

if __name__ == "__main__":
    cfg = dict(input_nz=32, output_nc=3, nf=16, nf_max=64,
               img_size=16, s0=4, res_ratio=0.1)
    B = 2

    key = jax.random.PRNGKey(0)
    kz, kp = jax.random.split(key)
    params = init_params(kp, cfg)
    z = jax.random.normal(kz, (B, cfg['input_nz']), jnp.float32)

    out = dcgan_resnet_generator(z, params)
    out = jax.block_until_ready(out)

    ref = _reference(z, params)
    assert out.shape == (B, cfg['output_nc'], cfg['img_size'], cfg['img_size'])
    assert jnp.allclose(out, ref, atol=2e-2, rtol=2e-2), \
        float(jnp.max(jnp.abs(out - ref)))
    print("KERNEL_OK")
</pallas_src>

<mosaic_0001>
module attributes {stable_mosaic.version = 11 : i64} {
  func.func @_fc_bn_lrelu_kernel(%arg0: memref<2x32xf32, #tpu.memory_space<vmem>>, %arg1: memref<32x1024xbf16, #tpu.memory_space<vmem>>, %arg2: memref<1x1024xf32, #tpu.memory_space<vmem>>, %arg3: memref<1x1024xf32, #tpu.memory_space<vmem>>, %arg4: memref<2x1024xf32, #tpu.memory_space<vmem>>) attributes {dimension_semantics = [], scalar_prefetch = 0 : i64, scratch_operands = 0 : i64, tpu.core_type = #tpu.core_type<tc>} {
    %c0 = arith.constant 0 : index
    %c0_0 = arith.constant 0 : index
    %0 = vector.load %arg0[%c0, %c0_0] : memref<2x32xf32, #tpu.memory_space<vmem>>, vector<2x32xf32>
    %1 = arith.truncf %0 : vector<2x32xf32> to vector<2x32xbf16>
    %c0_1 = arith.constant 0 : index
    %c0_2 = arith.constant 0 : index
    %2 = vector.load %arg1[%c0_1, %c0_2] : memref<32x1024xbf16, #tpu.memory_space<vmem>>, vector<32x1024xbf16>
    %cst = arith.constant dense<0.000000e+00> : vector<2x1024xf32>
    %3 = tpu.matmul %1, %2, %cst {dimension_numbers = #tpu.dot_dimension_numbers<[1], [0], [0], [1], [0, 0, 1, 1], [], []>} : vector<2x32xbf16>, vector<32x1024xbf16>, vector<2x1024xf32> -> vector<2x1024xf32>
    %c0_3 = arith.constant 0 : index
    %c0_4 = arith.constant 0 : index
    %4 = vector.load %arg2[%c0_3, %c0_4] : memref<1x1024xf32, #tpu.memory_space<vmem>>, vector<1x1024xf32>
    %5 = vector.broadcast %4 : vector<1x1024xf32> to vector<2x1024xf32>
    %6 = arith.mulf %3, %5 : vector<2x1024xf32>
    %c0_5 = arith.constant 0 : index
    %c0_6 = arith.constant 0 : index
    %7 = vector.load %arg3[%c0_5, %c0_6] : memref<1x1024xf32, #tpu.memory_space<vmem>>, vector<1x1024xf32>
    %8 = vector.broadcast %7 : vector<1x1024xf32> to vector<2x1024xf32>
    %9 = arith.addf %6, %8 : vector<2x1024xf32>
    %cst_7 = arith.constant 0.000000e+00 : f32
    %10 = vector.broadcast %cst_7 : f32 to vector<2x1024xf32>
    %11 = arith.cmpf ogt, %9, %10 : vector<2x1024xf32>
    %cst_8 = arith.constant 2.000000e-01 : f32
    %12 = vector.broadcast %cst_8 : f32 to vector<2x1024xf32>
    %13 = arith.mulf %12, %9 : vector<2x1024xf32>
    %14 = arith.select %11, %9, %13 : vector<2x1024xi1>, vector<2x1024xf32>
    %c0_9 = arith.constant 0 : index
    %c0_10 = arith.constant 0 : index
    %15 = vector.load %arg4[%c0_9, %c0_10] : memref<2x1024xf32, #tpu.memory_space<vmem>>, vector<2x1024xf32>
    tpu.vector_store %arg4[%c0_9, %c0_10], %14 {strides = array<i32>} : memref<2x1024xf32, #tpu.memory_space<vmem>>, vector<2x1024xf32>,
    return
  }
}

</mosaic_0001>

<bundles_post_ra>
// kernel: tpu_custom_call.1
= control target key start
LH: loop header
LB: loop body
LE: loop exit
PB: predicated region body
PF: predicated region fallthrough
CT: control target
= control target key end

     0   :  { %9 = vsyncpa [#allocation3], 0  ;;  %s729_s0 = inlined_call_operand.hbm [shape: f32[2,32], index: 0, kind: input, shape index: {}]   ;;  %s730_s1 = inlined_call_operand.hbm [shape: bf16[32,1024], index: 1, kind: input, shape index: {}]   ;;  %s731_s2 = inlined_call_operand.hbm [shape: f32[1,1024], index: 2, kind: input, shape index: {}]   ;;  %s732_s3 = inlined_call_operand.vmem [shape: f32[1,1024], index: 3, kind: input, shape index: {}]   ;;  %s733_s4 = inlined_call_operand.hbm [shape: f32[2,1024], index: 4, kind: output, shape index: {}]  }
   0x1   :  { %10 = vsyncpa [#allocation6], 0 }
   0x2   :  { %11 = vsyncpa [#allocation4], 0  ;;  %s630_s15 = smov [#allocation5]   ;;  %s536_s19 = scalar_lea.hbm %s730_s1, 2048 }
   0x3   :  { %s27_s16 = sshll.u32 %s630_s15, 4  ;;  %p537_p0 = scmp.ne.s32.totalorder %s730_s1, %s536_s19  ;;  %s28_s16 = int_to_ptr.vmem [resolvable:$true] %s27_s16 }
   0x4   :  { %p540_p1 = scmp.lt.u32.totalorder %s536_s19, %s730_s1 }
   0x6   :  { %p542_p2 = pnand %p540_p1, %p537_p0 }
   0x8   :  { %545 = shalt.err (!%p542_p2)
}
   0x9   :  { %s546_s24 = scalar_lea.vmem %s28_s16, 2048  ;;  %p551_p4 = scmp.lt.s32.totalorder %s28_s16, %s28_s16 }
   0xa   :  { %p547_p3 = scmp.ne.s32.totalorder %s28_s16, %s546_s24  ;;  %p552_p5 = scmp.lt.s32.totalorder %s546_s24, %s546_s24 }
   0xc   :  { %p553_p6 = por %p552_p5, %p551_p4 }
   0xe   :  { %p554_p7 = pnand %p553_p6, %p547_p3 }
  0x10   :  { %557 = shalt.err (!%p554_p7)
}
  0x11   :  { %s631_s25 = smov 512   ;;  %s632_s26 = smov 32  }
  0x12   :  { %33 = dma.hbm_to_vmem [thread:$0]  %s730_s1, 2048, %s28_s16, [#allocation6], %s631_s25, %s631_s25, %s632_s26  }
  0x13   :  { %s633_s29 = smov [#allocation2]   ;;  %s634_s5 = smov [#allocation7]  }
  0x14   :  { %s18_s30 = sshll.u32 %s633_s29, 4  ;;  %s40_s6 = sshll.u32 %s634_s5, 4  ;;  %s19_s30 = int_to_ptr.vmem [resolvable:$true] %s18_s30  ;;  %s41_s6 = int_to_ptr.vmem [resolvable:$true] %s40_s6 }
  0x15   :  { %s558_s9 = scalar_lea.hbm %s729_s0, 32 }
  0x16   :  { %p559_p8 = scmp.ne.s32.totalorder %s729_s0, %s558_s9  ;;  %p562_p9 = scmp.lt.u32.totalorder %s558_s9, %s729_s0 }
  0x18   :  { %p564_p10 = pnand %p562_p9, %p559_p8 }
  0x1a   :  { %567 = shalt.err (!%p564_p10)
}
  0x1b   :  { %s568_s1 = scalar_lea.vmem %s19_s30, 32  ;;  %p573_p12 = scmp.lt.s32.totalorder %s19_s30, %s19_s30 }
  0x1c   :  { %p569_p11 = scmp.ne.s32.totalorder %s19_s30, %s568_s1  ;;  %p574_p13 = scmp.lt.s32.totalorder %s568_s1, %s568_s1 }
  0x1e   :  { %p575_p0 = por %p574_p13, %p573_p12 }
  0x20   :  { %p576_p1 = pnand %p575_p0, %p569_p11 }
  0x22   :  { %579 = shalt.err (!%p576_p1)
}
  0x23   :  { %21 = dma.hbm_to_vmem [thread:$0]  %s729_s0, 32, %s19_s30, [#allocation3]  }
  0x24   :  { %s580_s18 = scalar_lea.hbm %s731_s2, 128 }
  0x25   :  { %p581_p2 = scmp.ne.s32.totalorder %s731_s2, %s580_s18  ;;  %p584_p3 = scmp.lt.u32.totalorder %s580_s18, %s731_s2 }
  0x27   :  { %p586_p4 = pnand %p584_p3, %p581_p2 }
  0x29   :  { %589 = shalt.err (!%p586_p4)
}
  0x2a   :  { %s590_s23 = scalar_lea.vmem %s41_s6, 128  ;;  %p595_p6 = scmp.lt.s32.totalorder %s41_s6, %s41_s6 }
  0x2b   :  { %p591_p5 = scmp.ne.s32.totalorder %s41_s6, %s590_s23  ;;  %p596_p7 = scmp.lt.s32.totalorder %s590_s23, %s590_s23 }
  0x2d   :  { %p597_p8 = por %p596_p7, %p595_p6 }
  0x2f   :  { %p598_p9 = pnand %p597_p8, %p591_p5 }
  0x31   :  { %601 = shalt.err (!%p598_p9)
}
  0x32   :  { %43 = dma.hbm_to_vmem [thread:$0]  %s731_s2, 128, %s41_s6, [#allocation6]  }
  0x33   :  { %624 = dma.done.wait [#allocation3], 32  }
  0x34   :  { %625 = vsyncadd [#allocation3], 4294967264 }
  0x35   :  { %626 = dma.done.wait [#allocation6], 2176  }
  0x36   :  { %627 = vsyncadd [#allocation6], 4294965120  ;;  %v635_v0 = vmov 0   ;;  %v58_v1 = vld [vmem:[#allocation5] sm:$0xff]  ;;  %v59_v3 = vld [vmem:[#allocation5 + $0x8] sm:$0xff]  ;;  %vm154_vm0 = vcmask 261120   ;;  %v324_v35 = vlaneseq }
  0x37   :  { %190 = vmatprep.mubr.bf16.mxu0 %v635_v0  ;;  %231 = vmatprep.mubr.bf16.mxu1 %v635_v0  ;;  %v62_v2 = vld [vmem:[#allocation5 + $0x20] sm:$0xff]  ;;  %v63_v5 = vld [vmem:[#allocation5 + $0x28] sm:$0xff]  ;;  %v60_v15 = vld [vmem:[#allocation5 + $0x10] sm:$0xff]  ;;  %v636_v50 = vmov 1983009808  }
  0x38   :  { %v509_v4 = vcombine.high %v58_v1, %v62_v2  ;;  %v508_v6 = vcombine.low %v58_v1, %v62_v2  ;;  %v66_v7 = vld [vmem:[#allocation5 + $0x40] sm:$0xff]  ;;  %v511_v9 = vcombine.high %v59_v3, %v63_v5  ;;  %v510_v10 = vcombine.low %v59_v3, %v63_v5  ;;  %v67_v12 = vld [vmem:[#allocation5 + $0x48] sm:$0xff]  ;;  %v64_v16 = vld [vmem:[#allocation5 + $0x30] sm:$0xff] }
  0x39   :  { %v70_v8 = vld [vmem:[#allocation5 + $0x60] sm:$0xff]  ;;  %v71_v13 = vld [vmem:[#allocation5 + $0x68] sm:$0xff]  ;;  %v61_v17 = vld [vmem:[#allocation5 + $0x18] sm:$0xff]  ;;  %v513_v22 = vcombine.high %v60_v15, %v64_v16  ;;  %v512_v29 = vcombine.low %v60_v15, %v64_v16  ;;  %v703_v36 = vshrl.u32 %v324_v35, 7  ;;  %v457_v51 = vunpack.c.l.s4 %v636_v50 }
  0x3a   :  { %v517_v11 = vcombine.high %v66_v7, %v70_v8  ;;  %158 = vmatprep.subr.bf16.mxu0 %v509_v4  ;;  %v519_v14 = vcombine.high %v67_v12, %v71_v13  ;;  %199 = vmatprep.subr.bf16.mxu1 %v511_v9  ;;  %v516_v18 = vcombine.low %v66_v7, %v70_v8  ;;  %v56_v19 = vld [vmem:[#allocation2] sm:$0x3]  ;;  %v68_v24 = vld [vmem:[#allocation5 + $0x50] sm:$0xff]  ;;  %v322_v38 = vld [vmem:[#allocation7] sm:$0xff] }
  0x3b   :  { %159 = vmatpush1.bf16.msra.mxu0 %v508_v6  ;;  %v65_v20 = vld [vmem:[#allocation5 + $0x38] sm:$0xff]  ;;  %200 = vmatpush1.bf16.msra.mxu1 %v510_v10  ;;  %v518_v21 = vcombine.low %v67_v12, %v71_v13  ;;  %v72_v25 = vld [vmem:[#allocation5 + $0x70] sm:$0xff]  ;;  %v57_v26 = vpack.c.bf16 %v56_v19, %v56_v19  ;;  %v326_v37 = vsub.s32 0, %v703_v36  ;;  %v334_v39 = vsub.s32 2, %v703_v36 }
  0x3c   :  { %160 = vmatprep.subr.bf16.mxu0 %v517_v11  ;;  %201 = vmatprep.subr.bf16.mxu1 %v519_v14  ;;  %v515_v23 = vcombine.high %v61_v17, %v65_v20  ;;  %v69_v27 = vld [vmem:[#allocation5 + $0x58] sm:$0xff]  ;;  %v514_v30 = vcombine.low %v61_v17, %v65_v20  ;;  %v521_v31 = vcombine.high %v68_v24, %v72_v25  ;;  %v330_v40 = vsub.s32 1, %v703_v36 }
  0x3d   :  { %v73_v28 = vld [vmem:[#allocation5 + $0x78] sm:$0xff]  ;;  %v520_v33 = vcombine.low %v68_v24, %v72_v25  ;;  %v338_v41 = vsub.s32 3, %v703_v36  ;;  %v327_v43 = vrot.slane %v322_v38, %v326_v37  ;;  %v335_v44 = vrot.slane %v322_v38, %v334_v39 }
  0x3e   :  { %v523_v32 = vcombine.high %v69_v27, %v73_v28  ;;  %v522_v34 = vcombine.low %v69_v27, %v73_v28  ;;  %v372_v42 = vld [vmem:[%s732_s3] sm:$0xff]  ;;  %v331_v45 = vrot.slane %v322_v38, %v330_v40  ;;  %v342_v46 = vsub.s32 4, %v703_v36  ;;  %s637_s3 = smov [#allocation8]  }
  0x3f   :  { %161 = vmatpush1.bf16.msra.mxu0 %v516_v18  ;;  %202 = vmatpush1.bf16.msra.mxu1 %v518_v21  ;;  %v377_v47 = vrot.slane %v372_v42, %v326_v37  ;;  %v339_v48 = vrot.slane %v322_v38, %v338_v41  ;;  %v350_v49 = vsub.s32 6, %v703_v36  ;;  %v385_v53 = vrot.slane %v372_v42, %v334_v39  ;;  %s498_s26 = sshll.u32 %s637_s3, 4  ;;  %s499_s26 = int_to_ptr.vmem [resolvable:$true] %s498_s26 }
  0x40   :  { %240 = vmatprep.subr.bf16.mxu0 %v513_v22  ;;  %281 = vmatprep.subr.bf16.mxu1 %v515_v23  ;;  %v381_v54 = vrot.slane %v372_v42, %v330_v40  ;;  %v346_v55 = vsub.s32 5, %v703_v36  ;;  %v354_v56 = vsub.s32 7, %v703_v36  ;;  %v389_v60 = vrot.slane %v372_v42, %v338_v41  ;;  %s602_s27 = scalar_lea.vmem %s499_s26, 256  ;;  %p607_p11 = scmp.lt.s32.totalorder %s499_s26, %s499_s26 }
  0x41   :  { %v343_v1 = vrot.slane %v322_v38, %v342_v46  ;;  %v351_v6 = vrot.slane %v322_v38, %v350_v49  ;;  %v458_v7 = vunpack.c.0.s8 %v457_v51  ;;  %v393_v15 = vrot.slane %v372_v42, %v342_v46  ;;  %p603_p10 = scmp.ne.s32.totalorder %s499_s26, %s602_s27  ;;  %p608_p12 = scmp.lt.s32.totalorder %s602_s27, %s602_s27 }
  0x42   :  { %524 = vmatmul.mubr.msk.bf16.vlgmr.msra.gmra.mrb[0].mxu0 %vm154_vm0, %v57_v26  ;;  %525 = vmatmul.mubr.msk.bf16.vlgmr.msra.gmra.mrb[0].mxu1 %vm154_vm0, %v57_v26  ;;  %v347_v11 = vrot.slane %v322_v38, %v346_v55  ;;  %v355_v12 = vrot.slane %v322_v38, %v354_v56  ;;  %v401_v24 = vrot.slane %v372_v42, %v350_v49 }
  0x43   :  { %241 = vmatpush1.bf16.msra.mxu0 %v512_v29  ;;  %282 = vmatpush1.bf16.msra.mxu1 %v514_v30  ;;  %v461_v20 = vsub.s32 %v458_v7, %v703_v36  ;;  %v397_v25 = vrot.slane %v372_v42, %v346_v55  ;;  %p609_p13 = por %p608_p12, %p607_p11 }
  0x44   :  { %242 = vmatprep.subr.bf16.mxu0 %v521_v31  ;;  %283 = vmatprep.subr.bf16.mxu1 %v523_v32  ;;  %v405_v31 = vrot.slane %v372_v42, %v354_v56 }
  0x45   :  { %272 = vmatprep.mubr.bf16.mxu0 %v635_v0  ;;  %313 = vmatprep.mubr.bf16.mxu1 %v635_v0  ;;  %p610_p0 = pnand %p609_p13, %p603_p10 }
  0x47   :  { %243 = vmatpush1.bf16.msra.mxu0 %v520_v33  ;;  %284 = vmatpush1.bf16.msra.mxu1 %v522_v34 }
  0x4a   :  { %526 = vmatmul.mubr.msk.bf16.vlgmr.msra.gmra.mrb[4].mxu0 %vm154_vm0, %v57_v26  ;;  %527 = vmatmul.mubr.msk.bf16.vlgmr.msra.gmra.mrb[4].mxu1 %vm154_vm0, %v57_v26 }
 0x115   :  { %v192_v52 = vpop.f32.mrb[0].mxu0  ;;  %v233_v58 = vpop.f32.mrb[0].mxu1 }
 0x116   :  { %v364_v57 = vmul.f32 %v327_v43, %v192_v52  ;;  %v194_v59 = vpop.f32.mrb[1].mxu0  ;;  %v366_v61 = vmul.f32 %v335_v44, %v233_v58  ;;  %v235_v63 = vpop.f32.mrb[1].mxu1 }
 0x117   :  { %v365_v62 = vmul.f32 %v331_v45, %v194_v59  ;;  %v196_v0 = vpop.f32.mrb[2].mxu0  ;;  %v367_v3 = vmul.f32 %v339_v48, %v235_v63  ;;  %v237_v4 = vpop.f32.mrb[2].mxu1 }
 0x118   :  { %v414_v2 = vadd.f32 %v377_v47, %v364_v57  ;;  %v197_v5 = vpop.f32.mrb[3].mxu0  ;;  %v416_v8 = vadd.f32 %v385_v53, %v366_v61  ;;  %v238_v10 = vpop.f32.mrb[3].mxu1 }
 0x119   :  { %v415_v9 = vadd.f32 %v381_v54, %v365_v62  ;;  %v417_v14 = vadd.f32 %v389_v60, %v367_v3 }
 0x11a   :  { %vm422_vm1 = vcmp.gt.f32.partialorder %v414_v2, 0.0  ;;  %v430_v13 = vmul.f32 0.2, %v414_v2  ;;  %vm424_vm2 = vcmp.gt.f32.partialorder %v416_v8, 0.0  ;;  %v432_v16 = vmul.f32 0.2, %v416_v8 }
 0x11b   :  { %vm423_vm3 = vcmp.gt.f32.partialorder %v415_v9, 0.0  ;;  %v431_v17 = vmul.f32 0.2, %v415_v9  ;;  %vm425_vm4 = vcmp.gt.f32.partialorder %v417_v14, 0.0  ;;  %v433_v19 = vmul.f32 0.2, %v417_v14 }
 0x11c   :  { %v438_v18 = vsel %vm422_vm1, %v414_v2, %v430_v13  ;;  %v440_v21 = vsel %vm424_vm2, %v416_v8, %v432_v16 }
 0x11d   :  { %v439_v22 = vsel %vm423_vm3, %v415_v9, %v431_v17  ;;  %v274_v23 = vpop.f32.mrb[4].mxu0  ;;  %v441_v27 = vsel %vm425_vm4, %v417_v14, %v433_v19  ;;  %v315_v29 = vpop.f32.mrb[4].mxu1 }
 0x11e   :  { %v454_v26 = vcombine.low %v438_v18, %v439_v22  ;;  %v368_v28 = vmul.f32 %v343_v1, %v274_v23  ;;  %v276_v30 = vpop.f32.mrb[5].mxu0  ;;  %v455_v32 = vcombine.low %v440_v21, %v441_v27  ;;  %v370_v33 = vmul.f32 %v351_v6, %v315_v29  ;;  %v317_v35 = vpop.f32.mrb[5].mxu1 }
 0x11f   :  { %v369_v34 = vmul.f32 %v347_v11, %v276_v30  ;;  %v278_v37 = vpop.f32.mrb[6].mxu0  ;;  %v371_v39 = vmul.f32 %v355_v12, %v317_v35  ;;  %v319_v40 = vpop.f32.mrb[6].mxu1 }
 0x120   :  { %v418_v38 = vadd.f32 %v393_v15, %v368_v28  ;;  %v279_v36 = vpop.f32.mrb[7].mxu0  ;;  %v462_v41 = vrot.slane %v454_v26, %v461_v20  ;;  %v420_v43 = vadd.f32 %v401_v24, %v370_v33  ;;  %v320_v45 = vpop.f32.mrb[7].mxu1  ;;  %v469_v46 = vrot.slane %v455_v32, %v461_v20 }
 0x121   :  { %v419_v44 = vadd.f32 %v397_v25, %v369_v34  ;;  %v421_v48 = vadd.f32 %v405_v31, %v371_v39 }
 0x122   :  { %vm426_vm5 = vcmp.gt.f32.partialorder %v418_v38, 0.0  ;;  %v434_v47 = vmul.f32 0.2, %v418_v38  ;;  %vm428_vm6 = vcmp.gt.f32.partialorder %v420_v43, 0.0  ;;  %v436_v49 = vmul.f32 0.2, %v420_v43 }
 0x123   :  { %vm427_vm7 = vcmp.gt.f32.partialorder %v419_v44, 0.0  ;;  %v435_v42 = vmul.f32 0.2, %v419_v44  ;;  %vm429_vm8 = vcmp.gt.f32.partialorder %v421_v48, 0.0  ;;  %v437_v51 = vmul.f32 0.2, %v421_v48 }
 0x124   :  { %v442_v50 = vsel %vm426_vm5, %v418_v38, %v434_v47  ;;  %v470_v52 = vcombine.low %v462_v41, %v469_v46  ;;  %v444_v53 = vsel %vm428_vm6, %v420_v43, %v436_v49 }
 0x125   :  { %v443_v54 = vsel %vm427_vm7, %v419_v44, %v435_v42  ;;  %v445_v56 = vsel %vm429_vm8, %v421_v48, %v437_v51 }
 0x126   :  { %v471_v55 = vcombine.low %v442_v50, %v443_v54  ;;  %490 = vst [vmem:[#allocation8] sm:$0xff] %v470_v52  ;;  %v472_v57 = vcombine.low %v444_v53, %v445_v56 }
 0x128   :  { %v479_v58 = vrot.slane %v471_v55, %v461_v20  ;;  %v486_v59 = vrot.slane %v472_v57, %v461_v20 }
 0x12a   :  { %v487_v60 = vcombine.low %v479_v58, %v486_v59 }
 0x12c   :  { %491 = vst [vmem:[#allocation8 + $0x8] sm:$0xff] %v487_v60 }
 0x12d   :  { %613 = shalt.err (!%p610_p0)
}
 0x12e   :  { %s614_s30 = scalar_lea.hbm %s733_s4, 256 }
 0x12f   :  { %p615_p1 = scmp.ne.s32.totalorder %s733_s4, %s614_s30  ;;  %p618_p2 = scmp.lt.u32.totalorder %s614_s30, %s733_s4 }
 0x131   :  { %p620_p3 = pnand %p618_p2, %p615_p1 }
 0x133   :  { %623 = shalt.err (!%p620_p3)
}
 0x134   :  { %501 = dma.vmem_to_hbm [thread:$0]  %s499_s26, 256, %s733_s4, [#allocation4]  }
 0x135   :  { %628 = dma.done.wait [#allocation4], 256  }
 0x136   :  { %629 = vsyncadd [#allocation4], 4294967040 }
 0x137   :  { %505 = vsyncpa [#allocation3], 1 }
 0x138   :  { %506 = vsyncpa [#allocation6], 1 }
 0x139   :  { %507 = vsyncpa [#allocation4], 1 }

</bundles_post_ra>
